<compile_context>
chip_gen: v5e
topology: v5e:2x2
jax: 0.10.0
libtpu: 0.0.40
codegen_flags: <defaults>
</compile_context>

<pallas_src>
import functools

import jax
import jax.numpy as jnp
from jax.experimental import pallas as pl
from jax.experimental.pallas import tpu as pltpu


def _spatial_loss_kernel(pred_ref, ref_ref, w_ref, out_ref, *, spatial_size, tile_s):
    s = pl.program_id(1)

    @pl.when(s == 0)
    def _():
        out_ref[...] = jnp.zeros_like(out_ref)

    # Bias of the 1x1 conv cancels in pan_pred - pan_ref, so work on the diff.
    d = pred_ref[0].astype(jnp.float32) - ref_ref[0].astype(jnp.float32)  # (C, tile_s)

    # 1x1 conv of the difference: weighted channel (sublane) reduce, lane-dense.
    wd = jnp.sum(d * w_ref[...], axis=0, keepdims=True)                   # (1, tile_s)
    a = jnp.abs(wd)

    # Mask the ragged spatial tail (compile-time no-op when tile_s divides S).
    if spatial_size % tile_s != 0:
        lane = jax.lax.broadcasted_iota(jnp.int32, (1, tile_s), 1)
        a = jnp.where(s * tile_s + lane < spatial_size, a, 0.0)

    # Accumulate per-batch lane-dense partial sums (output block resident in
    # VMEM across the spatial grid axis).
    out_ref[0] += a


def _pick_tile_s(S, C, itemsize, budget_bytes=4 << 20):
    # Whole spatial slice per step if it fits the per-block budget
    # (also avoids any tail masking and any (8,128)-divisibility concern).
    if S * C * itemsize <= budget_bytes:
        return S
    t = budget_bytes // (C * itemsize)
    return max(128, (t // 128) * 128)


def spatial_loss(pred_HS, ref_HS, weight, bias=None, *, tile_s=None):
    """pred_HS, ref_HS: [N, C, H, W]; weight: [1, C, 1, 1]; bias: unused (cancels)."""
    del bias  # make_PAN bias cancels exactly in pan_pred - pan_ref.
    N, C, H, W = pred_HS.shape
    S = H * W

    # Free reshapes: keep the NCHW memory layout; no transpose / pad / cast of
    # the big tensors in the wrapper.
    pred3 = pred_HS.reshape(N, C, S)
    ref3 = ref_HS.reshape(N, C, S)
    w2 = weight.reshape(C, 1).astype(jnp.float32)

    if tile_s is None:
        tile_s = _pick_tile_s(S, C, jnp.dtype(pred_HS.dtype).itemsize)
    tile_s = min(tile_s, S)
    if tile_s != S:
        tile_s = max(128, (tile_s // 128) * 128)

    s_tiles = pl.cdiv(S, tile_s)
    kernel = functools.partial(_spatial_loss_kernel, spatial_size=S, tile_s=tile_s)

    partials = pl.pallas_call(
        kernel,
        out_shape=jax.ShapeDtypeStruct((N, 1, tile_s), jnp.float32),
        grid_spec=pltpu.PrefetchScalarGridSpec(
            num_scalar_prefetch=0,
            grid=(N, s_tiles),
            in_specs=[
                pl.BlockSpec((1, C, tile_s), lambda n, s: (n, 0, s)),  # pred tile
                pl.BlockSpec((1, C, tile_s), lambda n, s: (n, 0, s)),  # ref tile
                pl.BlockSpec((C, 1), lambda n, s: (0, 0)),             # conv weight
            ],
            out_specs=pl.BlockSpec((1, 1, tile_s), lambda n, s: (n, 0, 0)),
        ),
        compiler_params=pltpu.CompilerParams(
            dimension_semantics=("parallel", "arbitrary"),  # batch parallel (megacore),
        ),                                                  # spatial = accumulation axis
    )(pred3, ref3, w2)

    # Tiny final reduce + mean over N*1*H*W elements (matches nn.L1Loss 'mean').
    return jnp.sum(partials) / (N * S)


def reference_spatial_loss(pred_HS, ref_HS, weight, bias):
    """Pure-JAX reference matching the PyTorch module."""
    w = weight.reshape(1, -1, 1, 1)
    pan_pred = jnp.sum(pred_HS * w, axis=1, keepdims=True) + bias.reshape(1, 1, 1, 1)
    pan_ref = jnp.sum(ref_HS * w, axis=1, keepdims=True) + bias.reshape(1, 1, 1, 1)
    return jnp.mean(jnp.abs(pan_pred - pan_ref))


if __name__ == "__main__":
    key = jax.random.PRNGKey(0)
    N, C, H, W = 2, 4, 16, 16

    k1, k2, k3, k4 = jax.random.split(key, 4)
    pred_HS = jax.random.normal(k1, (N, C, H, W), dtype=jnp.float32)
    ref_HS = jax.random.normal(k2, (N, C, H, W), dtype=jnp.float32)

    # Deterministic Conv2d(in_channels=C, out_channels=1, kernel_size=1) params.
    bound = 1.0 / (C ** 0.5)
    conv_weight = jax.random.uniform(k3, (1, C, 1, 1), jnp.float32, -bound, bound)
    conv_bias = jax.random.uniform(k4, (1,), jnp.float32, -bound, bound)

    loss = spatial_loss(pred_HS, ref_HS, conv_weight, conv_bias)
    loss = jax.block_until_ready(loss)

    ref = reference_spatial_loss(pred_HS, ref_HS, conv_weight, conv_bias)
    assert jnp.allclose(loss, ref, rtol=1e-5, atol=1e-6), (loss, ref)

    print("KERNEL_OK")
</pallas_src>

<mosaic_0001>
module attributes {stable_mosaic.version = 11 : i64} {
  func.func @_spatial_loss_kernel(%arg0: i32, %arg1: i32, %arg2: memref<1x4x256xf32, #tpu.memory_space<vmem>>, %arg3: memref<1x4x256xf32, #tpu.memory_space<vmem>>, %arg4: memref<4x1xf32, #tpu.memory_space<vmem>>, %arg5: memref<1x1x256xf32, #tpu.memory_space<vmem>>) attributes {dimension_semantics = [#tpu.dimension_semantics<parallel>, #tpu.dimension_semantics<arbitrary>], iteration_bounds = array<i64: 2, 1>, scalar_prefetch = 0 : i64, scratch_operands = 0 : i64, tpu.core_type = #tpu.core_type<tc>, window_params = [{transform_indices = @transform_0, window_bounds = array<i64: 1, 4, 256>}, {transform_indices = @transform_1, window_bounds = array<i64: 1, 4, 256>}, {pipeline_mode = #tpu.pipeline_mode<synchronous>, transform_indices = @transform_2, window_bounds = array<i64: 4, 1>}, {transform_indices = @transform_3, window_bounds = array<i64: 1, 1, 256>}]} {
    %c0_i32 = arith.constant 0 : i32
    %0 = arith.cmpi eq, %arg1, %c0_i32 : i32
    %1 = arith.extui %0 : i1 to i32
    %c0_i32_0 = arith.constant 0 : i32
    %2 = arith.cmpi ne, %1, %c0_i32_0 : i32
    scf.if %2 {
      %cst_14 = arith.constant 0.000000e+00 : f32
      %20 = vector.broadcast %cst_14 : f32 to vector<1x1x256xf32>
      %c0_15 = arith.constant 0 : index
      %c0_16 = arith.constant 0 : index
      %c0_17 = arith.constant 0 : index
      %21 = vector.load %arg5[%c0_15, %c0_16, %c0_17] : memref<1x1x256xf32, #tpu.memory_space<vmem>>, vector<1x1x256xf32>
      tpu.vector_store %arg5[%c0_15, %c0_16, %c0_17], %20 {strides = array<i32>} : memref<1x1x256xf32, #tpu.memory_space<vmem>>, vector<1x1x256xf32>,
    } else {
    }
    %c0 = arith.constant 0 : index
    %c0_1 = arith.constant 0 : index
    %c0_2 = arith.constant 0 : index
    %3 = vector.load %arg2[%c0, %c0_1, %c0_2] : memref<1x4x256xf32, #tpu.memory_space<vmem>>, vector<1x4x256xf32>
    %4 = vector.shape_cast %3 : vector<1x4x256xf32> to vector<4x256xf32>
    %c0_3 = arith.constant 0 : index
    %c0_4 = arith.constant 0 : index
    %c0_5 = arith.constant 0 : index
    %5 = vector.load %arg3[%c0_3, %c0_4, %c0_5] : memref<1x4x256xf32, #tpu.memory_space<vmem>>, vector<1x4x256xf32>
    %6 = vector.shape_cast %5 : vector<1x4x256xf32> to vector<4x256xf32>
    %7 = arith.subf %4, %6 : vector<4x256xf32>
    %c0_6 = arith.constant 0 : index
    %c0_7 = arith.constant 0 : index
    %8 = vector.load %arg4[%c0_6, %c0_7] : memref<4x1xf32, #tpu.memory_space<vmem>>, vector<4x1xf32>
    %9 = vector.broadcast %8 : vector<4x1xf32> to vector<4x256xf32>
    %10 = arith.mulf %7, %9 : vector<4x256xf32>
    %cst = arith.constant dense<0.000000e+00> : vector<256xf32>
    %11 = vector.multi_reduction <add>, %10, %cst [0] : vector<4x256xf32> to vector<256xf32>
    %12 = vector.shape_cast %11 : vector<256xf32> to vector<1x256xf32>
    %13 = math.absf %12 : vector<1x256xf32>
    %c0_8 = arith.constant 0 : index
    %c0_9 = arith.constant 0 : index
    %c0_10 = arith.constant 0 : index
    %14 = vector.load %arg5[%c0_8, %c0_9, %c0_10] : memref<1x1x256xf32, #tpu.memory_space<vmem>>, vector<1x1x256xf32>
    %15 = vector.shape_cast %14 : vector<1x1x256xf32> to vector<1x256xf32>
    %16 = arith.addf %15, %13 : vector<1x256xf32>
    %c0_11 = arith.constant 0 : index
    %c0_12 = arith.constant 0 : index
    %c0_13 = arith.constant 0 : index
    %17 = vector.load %arg5[%c0_11, %c0_12, %c0_13] : memref<1x1x256xf32, #tpu.memory_space<vmem>>, vector<1x1x256xf32>
    %18 = vector.shape_cast %17 : vector<1x1x256xf32> to vector<1x256xf32>
    %19 = vector.shape_cast %16 : vector<1x256xf32> to vector<1x1x256xf32>
    tpu.vector_store %arg5[%c0_11, %c0_12, %c0_13], %19 {strides = array<i32>} : memref<1x1x256xf32, #tpu.memory_space<vmem>>, vector<1x1x256xf32>,
    return
  }
  func.func @transform_0(%arg0: i32, %arg1: i32) -> (i32, i32, i32) {
    %c0_i32 = arith.constant 0 : i32
    %c0_i32_0 = arith.constant 0 : i32
    return %arg0, %c0_i32, %arg1 : i32, i32, i32
  }
  func.func @transform_1(%arg0: i32, %arg1: i32) -> (i32, i32, i32) {
    %c0_i32 = arith.constant 0 : i32
    %c0_i32_0 = arith.constant 0 : i32
    return %arg0, %c0_i32, %arg1 : i32, i32, i32
  }
  func.func @transform_2(%arg0: i32, %arg1: i32) -> (i32, i32) {
    %c0_i32 = arith.constant 0 : i32
    %c0_i32_0 = arith.constant 0 : i32
    %c0_i32_1 = arith.constant 0 : i32
    return %c0_i32, %c0_i32_0 : i32, i32
  }
  func.func @transform_3(%arg0: i32, %arg1: i32) -> (i32, i32, i32) {
    %c0_i32 = arith.constant 0 : i32
    %c0_i32_0 = arith.constant 0 : i32
    %c0_i32_1 = arith.constant 0 : i32
    return %arg0, %c0_i32, %c0_i32_0 : i32, i32, i32
  }
}

</mosaic_0001>

<bundles_post_ra>
// kernel: tpu_custom_call.1
= control target key start
LH: loop header
LB: loop body
LE: loop exit
PB: predicated region body
PF: predicated region fallthrough
CT: control target
= control target key end

     0   :  { %8 = vsyncpa [#allocation3], 0  ;;  %s841_s0 = inlined_call_operand.hbm [shape: f32[2,4,256], index: 0, kind: input, shape index: {}]   ;;  %s842_s1 = inlined_call_operand.hbm [shape: f32[2,4,256], index: 1, kind: input, shape index: {}]   ;;  %s843_s2 = inlined_call_operand.vmem [shape: f32[4,1], index: 2, kind: input, shape index: {}]   ;;  %s844_s3 = inlined_call_operand.hbm [shape: f32[2,1,256], index: 3, kind: output, shape index: {}]  }
   0x1   :  { %10 = vsyncpa [#allocation3 + $0x1], 0 }
   0x2   :  { %11 = vsyncpa [#allocation6], 0 }
   0x3   :  { %13 = vsyncpa [#allocation6 + $0x1], 0 }
   0x4   :  { %14 = vsyncpa [#allocation4], 0 }
   0x5   :  { %16 = vsyncpa [#allocation4 + $0x1], 0  ;;  %s695_s12 = smov 0   ;;  %s697_s13 = smov 0  }
   0x6   :  { %s699_s14 = smov 0   ;;  %s701_s15 = smov 0  }
   0x7   :  { %s703_s16 = smov 0   ;;  %s705_s17 = smov 0  }
   0x8 LB: > { %s433_s18 = sadd.s32 4294967295, %s670_s17   ;;  %s434_s19 = sadd.s32 4294967294, %s670_s17   ;;  %s670_s17 = sphi %s705_s17, %s22_s17   ;;  %s666_s16 = sphi %s703_s16, %s855_s16   ;;  %s662_s15 = sphi %s701_s15, %s854_s15   ;;  %s658_s14 = sphi %s699_s14, %s853_s14   ;;  %s654_s13 = sphi %s697_s13, %s852_s13   ;;  %s650_s12 = sphi %s695_s12, %s851_s12  }
   0x9   : > { %s34_s20 = sadd.s32 1, %s666_s16  ;;  %s43_s21 = sadd.s32 1, %s658_s14 }
   0xa   : > { %p36_p0 = scmp.ge.s32.totalorder %s34_s20, 2  ;;  %p50_p1 = scmp.ne.s32.totalorder %s658_s14, %s654_s13 }
   0xb   : > { %p51_p2 = scmp.eq.s32.totalorder %s670_s17, 0  ;;  %p56_p3 = scmp.ne.s32.totalorder %s654_s13, %s650_s12 }
   0xc   : > { %s857_s20 = smov (%p36_p0, %s34_s20), 0  ;;  %p57_p5 = scmp.eq.s32.totalorder %s433_s18, 0 }
   0xd   : > { %p736_p4 = por %p51_p2, %p50_p1  ;;  %s38_s23 = ssub.s32 %s666_s16, %s857_s20 }
   0xe   : > { %p129_p6 = scmp.eq.s32.totalorder %s433_s18, 1  ;;  %p41_p7 = scmp.eq.s32.totalorder %s38_s23, 0 }
   0xf   : > { %p742_p8 = por %p57_p5, %p56_p3  ;;  %p135_p10 = scmp.eq.s32.totalorder %s434_s19, 1 }
  0x10   : > { %p746_p9 = por %p129_p6, %p50_p1  ;;  %p436_p12 = scmp.ge.s32.totalorder %s670_s17, 2 }
  0x11   : > { %s751_s26 = scalar_select %p41_p7, %s658_s14, %s43_s21  }
  0x12   : > { %p753_p11 = por %p135_p10, %p56_p3  ;;  %p470_p13 = scmp.lt.s32.totalorder %s670_s17, 2 }
  0x13   : > { %s158_s28 = sand.u32 1, %s658_s14   ;;  %s451_s30 = sshll.u32 %s666_s16, 3 }
  0x14   : > { %s437_s29 = sshll.u32 %s158_s28, 3  ;;  %s169_s6 = scalar_lea.hbm %s841_s0, %s451_s30 }
  0x15   : > { %s162_s7 = scalar_lea.vmem [#allocation2], %s437_s29  ;;  %s171_s9 = sshll.u32 %s169_s6, 4  ;;  %s172_s9 = int_to_ptr.hbm [resolvable:$true] %s171_s9 }
  0x16   : > { %s173_s8 = sshll.u32 %s162_s7, 4  ;;  %p460_p0 = pnand %p470_p13, %p736_p4  ;;  %s174_s8 = int_to_ptr.vmem [resolvable:$true] %s173_s8 }
  0x17   : > { %p443_p1 = scmp.ge.s32.totalorder %s670_s17, 1  ;;  %p200_p2 = scmp.lt.s32.totalorder %s670_s17, 3 }
  0x18   : > { %s159_s10 = scalar_lea.sflag [#allocation3], %s158_s28  ;;  %s191_s19 = scalar_lea.hbm %s842_s1, %s451_s30 }
  0x19   : > { %462 = dma.hbm_to_vmem [thread:$0]  (!%p460_p0), %s172_s9, 128, %s174_s8, %s159_s10  }
  0x1a   : > { %p201_p3 = pnand %p443_p1, %p200_p2  ;;  %s184_s21 = scalar_lea.vmem [#allocation5], %s437_s29 }
  0x1b   : > { %s195_s23 = sshll.u32 %s184_s21, 4  ;;  %s193_s4 = sshll.u32 %s191_s19, 4  ;;  %s196_s23 = int_to_ptr.vmem [resolvable:$true] %s195_s23  ;;  %s194_s4 = int_to_ptr.hbm [resolvable:$true] %s193_s4 }
  0x1c   : > { %s181_s5 = scalar_lea.sflag [#allocation6], %s158_s28  ;;  %204 = sbr.rel (%p201_p3) target bundleno = 188 (0xbc), region = 32 }
  0x1d   : > { %465 = dma.hbm_to_vmem [thread:$0]  (!%p460_p0), %s194_s4, 128, %s196_s23, %s181_s5  }
  0x1e   : > { %s772_s22 = sand.u32 (!%p201_p3), 1, %s654_s13  }
  0x1f   : > { %s444_s6 = sshll.u32 (!%p201_p3), %s772_s22, 3  ;;  %s207_s7 = scalar_lea.sflag (!%p201_p3), [#allocation3], %s772_s22 }
  0x20   : > { %s210_s8 = scalar_lea.vmem (!%p201_p3), [#allocation2], %s444_s6 }
  0x21   : > { %637 = dma.done.wait (%p742_p8), %s207_s7, 128  }
  0x22   : > { %639 = vsyncadd (%p742_p8), %s207_s7, 4294967168  ;;  %s217_s29 = scalar_lea.sflag [#allocation6], %s772_s22  ;;  %s220_s28 = scalar_lea.vmem [#allocation5], %s444_s6 }
  0x23   : > { %641 = dma.done.wait (%p742_p8), %s217_s29, 128  }
  0x24   : > { %643 = vsyncadd (%p742_p8), %s217_s29, 4294967168  ;;  %v672_v0 = vmov 0   ;;  %v263_v1 = vld [vmem:[%s843_s2] sm:$0xf]  ;;  %s446_s10 = sshll.u32 %s772_s22, 1  ;;  %v255_v2 = vlaneseq  ;;  %v673_v4 = vmov 0.0  }
  0x25   : > { %523 = vset.pattern.permute.xlu0 %v672_v0  ;;  %s793_s11 = scalar_lea.vmem [#allocation7], %s446_s10  ;;  %v674_v5 = vmov 839922192   ;;  %v260_v7 = vld [vmem:[%s210_s8] sm:$0xff]  ;;  %v261_v8 = vld [vmem:[%s220_s28] sm:$0xff]  ;;  %vm280_vm1 = vcmask 1043456  }
  0x26   : > { %266 = vperm.xlu0 %523, %v263_v1   ;;  %vm789_vm0 = vcmp.lt.s32.totalorder %v255_v2, 256  ;;  %v269_v6 = vunpack.c.l.s4 %v674_v5  ;;  %v262_v10 = vsub.f32 %v260_v7, %v261_v8  ;;  %s448_s24 = sshll.u32 %s662_s15, 1  ;;  %vm301_vm2 = vcmask 1040384   ;;  %s323_s23 = sshll.u32 %s793_s11, 4  ;;  %s324_s23 = int_to_ptr.vmem [resolvable:$true] %s323_s23 }
  0x27   : > { %259 = vst.msk [vmem:[%s793_s11] sm:$0x3] %vm789_vm0, %v673_v4  ;;  %s321_s21 = scalar_lea.hbm %s844_s3, %s448_s24  ;;  %s311_s15 = scalar_lea.sflag [#allocation4], %s772_s22 }
  0x28   : > { %v270_v9 = vunpack.c.0.s8 %v269_v6  ;;  %s325_s4 = sshll.u32 %s321_s21, 4  ;;  %s604_s29 = scalar_lea.hbm %s844_s3, 4  ;;  %s326_s4 = int_to_ptr.hbm [resolvable:$true] %s325_s4 }
  0x29   : > { %s598_s5 = sshra.s32 %s326_s4, 4  ;;  %s599_s5 = int_to_ptr.hbm [resolvable:$true] %s598_s5 }
  0x2a   : > { %s600_s6 = scalar_lea.hbm %s599_s5, 2  ;;  %p605_p7 = scmp.lt.s32.totalorder %s599_s5, %s844_s3 }
  0x2b   : > { %p601_p4 = scmp.ne.s32.totalorder %s599_s5, %s600_s6  ;;  %p606_p8 = scmp.lt.s32.totalorder %s604_s29, %s600_s6 }
  0x2d   : > { %p602_p5 = pnand %p601_p4, %p746_p9  ;;  %p607_p10 = por %p606_p8, %p605_p7 }
  0x2e   : > { %v297_v32 = vld [vmem:[%s793_s11] sm:$0x3] }
  0x2f   : > { %p603_p6 = pneg %p602_p5 }
  0x31   : > { %p608_p13 = pnand %p607_p10, %p603_p6 }
  0x98   : > { %v267_v11 = vpop.permute.xlu0 %266 }
  0x99   : > { %v271_v12 = vperm.slane %v267_v11, %v270_v9 }
  0x9b   : > { %v273_v13 = vmul.f32 %v271_v12, %v262_v10 }
  0x9d   : > { %275 = vst [vmem:[#allocation1] ss:$2 sm:$0xff] %v273_v13 }
  0xa4   : > { %v276_v14 = vld.sshfl [vmem:[#allocation1] sm:$0xff pattern:$0x75316420]  ;;  %v277_v15 = vld.sshfl [vmem:[#allocation1 + $0x8] sm:$0xff pattern:$0x75316420] }
  0xa5   : > { %v281_v16 = vsel %vm280_vm1, %v276_v14, 0.0  ;;  %v288_v17 = vsel %vm280_vm1, %v277_v15, 0.0 }
  0xa6   : > { %v282_v18 = vrot.slane %v281_v16, 4  ;;  %v289_v19 = vrot.slane %v288_v17, 4 }
  0xa8   : > { %v283_v20 = vadd.f32 %v282_v18, %v281_v16  ;;  %v290_v21 = vadd.f32 %v289_v19, %v288_v17 }
  0xaa   : > { %v284_v22 = vrot.slane %v283_v20, 2  ;;  %v291_v23 = vrot.slane %v290_v21, 2 }
  0xac   : > { %v285_v24 = vadd.f32 %v284_v22, %v283_v20  ;;  %v292_v25 = vadd.f32 %v291_v23, %v290_v21 }
  0xae   : > { %v286_v26 = vrot.slane %v285_v24, 1  ;;  %v293_v27 = vrot.slane %v292_v25, 1 }
  0xb0   : > { %v287_v28 = vadd.f32 %v286_v26, %v285_v24  ;;  %v294_v29 = vadd.f32 %v293_v27, %v292_v25 }
  0xb2   : > { %v296_v30 = vand.u32 2147483647, %v294_v29  ;;  %v295_v31 = vand.u32 2147483647, %v287_v28 }
  0xb4   : > { %v300_v33 = vrot.slane %v296_v30, 7 }
  0xb6   : > { %v302_v34 = vsel %vm301_vm2, %v295_v31, %v300_v33 }
  0xb7   : > { %v304_v35 = vadd.f32 %v302_v34, %v297_v32 }
  0xb9   : > { %309 = vst.msk [vmem:[%s793_s11] sm:$0x3] %vm789_vm0, %v304_v35 }
  0xba   : > { %611 = shalt.err (!%p608_p13)
}
  0xbb   : > { %457 = dma.vmem_to_hbm [thread:$0]  (%p746_p9), %s324_s23, 32, %s326_s4, %s311_s15  }
  0xbc PF: > { %s337_s22 = sand.u32 1, %s650_s12   ;;  %p467_p0 = pnand %p436_p12, %p753_p11 }
  0xbd   : > { %s338_s9 = scalar_lea.sflag [#allocation4], %s337_s22 }
  0xbe   : > { %p468_p1 = pneg %p467_p0 }
  0xc0   : > { %645 = dma.done.wait (%p468_p1), %s338_s9, 32  }
  0xc1   : > { %647 = vsyncadd (%p468_p1), %s338_s9, 4294967264  ;;  %s22_s17 = sadd.s32 1, %s670_s17   ;;  %s851_s12 = smov %s654_s13 }
  0xc2   : > { %p19_p2 = scmp.ge.s32.totalorder %s22_s17, 4   ;;  %s852_s13 = smov %s658_s14 }
  0xc3   : > { %s853_s14 = smov %s751_s26  ;;  %s854_s15 = smov %s666_s16 }
  0xc4   : > { %s855_s16 = smov %s857_s20  ;;  %21 = sbr.rel (!%p19_p2) target bundleno = 8 (0x8), region = 94 }
  0xc9   :  { %344 = vsyncpa [#allocation3], 1 }
  0xca   :  { %346 = vsyncpa [#allocation3 + $0x1], 1 }
  0xcb   :  { %347 = vsyncpa [#allocation6], 1 }
  0xcc   :  { %349 = vsyncpa [#allocation6 + $0x1], 1 }
  0xcd   :  { %350 = vsyncpa [#allocation4], 1 }
  0xce   :  { %352 = vsyncpa [#allocation4 + $0x1], 1 }

</bundles_post_ra>
